<compile_context>
chip_gen: v7x
topology: tpu7x:2x2x1
jax: 0.10.0
libtpu: 0.0.40
codegen_flags: <defaults>
</compile_context>

<pallas_src>
import jax
import jax.numpy as jnp
from jax import lax
from jax.experimental import pallas as pl
from jax.experimental.pallas import tpu as pltpu

KERNEL_SIZE = 7


def _round_up(x, m):
    return ((x + m - 1) // m) * m


def _largest_divisor_leq(n, cap):
    cap = max(1, min(n, cap))
    for d in range(cap, 0, -1):
        if n % d == 0:
            return d
    return 1


def _vmem_limit_bytes():
    # 3/4 of physical VMEM (96 MiB on v5e/v6e, 48 MiB on v7x); 48 MiB fallback
    # is safe on every generation if the query is unavailable.
    try:
        cap = int(pltpu.get_tpu_info().vmem_capacity_bytes)
        return max(32 * 1024 * 1024, min(cap * 3 // 4, 112 * 1024 * 1024))
    except Exception:
        return 48 * 1024 * 1024


def _choose_block_c(C, Bt, HW, budget_bytes, cap=None):
    """Channels per grid step: multiple of 8 dividing C (or all of C)."""
    if C % 8 != 0:
        return C                      # single channel block; tail handled in-kernel
    limit = C if cap is None else max(8, min(C, cap))
    best = 8
    for ct in range(8, limit + 1, 8):
        if C % ct == 0 and Bt * ct * HW * 4 <= budget_bytes:
            best = ct
    return best


def _channel_reduce(x3, *, Bt, Ct, vmem_limit):
    """x3: (N, C, HW) -> (N, 2, HW) f32 with [mean, max] over channels."""
    N, C, HW = x3.shape
    n_blocks = N // Bt
    c_blocks = C // Ct
    nchunks = Ct // 8                 # full 8-channel sublane chunks per block
    rem = Ct % 8                      # > 0 only when Ct == C (single block)

    def kernel(x_ref, o_ref, sum8_ref, max8_ref):
        cb = pl.program_id(1)
        last_cb = pl.num_programs(1) - 1

        # Streamed reduction of this (Bt, Ct, HW) block: one vld + add + max
        # per loaded vreg; channels stay on the sublane axis until finalize.
        s8 = jnp.zeros((Bt, 8, HW), jnp.float32)
        m8 = jnp.full((Bt, 8, HW), -jnp.inf, jnp.float32)
        if nchunks > 0:
            def body(i, carry):
                s, m = carry
                start = pl.multiple_of(i * 8, 8)
                blk = x_ref[:, pl.ds(start, 8), :].astype(jnp.float32)
                return s + blk, jnp.maximum(m, blk)
            s8, m8 = lax.fori_loop(0, nchunks, body, (s8, m8), unroll=2)

        @pl.when(cb == 0)
        def _():
            sum8_ref[...] = s8
            max8_ref[...] = m8

        @pl.when(cb > 0)
        def _():
            sum8_ref[...] = sum8_ref[...] + s8
            max8_ref[...] = jnp.maximum(max8_ref[...], m8)

        # Finalize: collapse the 8 sublane partials, fold in any channel tail,
        # and emit the lane-dense avg / max maps.
        @pl.when(cb == last_cb)
        def _():
            s = jnp.sum(sum8_ref[...], axis=1)            # (Bt, HW)
            m = jnp.max(max8_ref[...], axis=1)
            if rem > 0:                                   # implies c_blocks == 1
                tail = x_ref[:, nchunks * 8:, :].astype(jnp.float32)
                s = s + jnp.sum(tail, axis=1)
                m = jnp.maximum(m, jnp.max(tail, axis=1))
            o_ref[:, 0, :] = s * jnp.float32(1.0 / C)
            o_ref[:, 1, :] = m

    grid_spec = pltpu.PrefetchScalarGridSpec(
        num_scalar_prefetch=0,
        grid=(n_blocks, c_blocks),
        in_specs=[pl.BlockSpec((Bt, Ct, HW), lambda nb, cb: (nb, cb, 0))],
        out_specs=pl.BlockSpec((Bt, 2, HW), lambda nb, cb: (nb, 0, 0)),
        scratch_shapes=[
            pltpu.VMEM((Bt, 8, HW), jnp.float32),   # channel-sum partials
            pltpu.VMEM((Bt, 8, HW), jnp.float32),   # channel-max partials
        ],
    )
    cost = pl.CostEstimate(
        flops=int(2 * N * C * HW),
        transcendentals=0,
        bytes_accessed=int(N * C * HW * x3.dtype.itemsize + N * 2 * HW * 4),
    )
    return pl.pallas_call(
        kernel,
        out_shape=jax.ShapeDtypeStruct((N, 2, HW), jnp.float32),
        grid_spec=grid_spec,
        compiler_params=pltpu.CompilerParams(
            dimension_semantics=("parallel", "arbitrary"),
            vmem_limit_bytes=vmem_limit,
        ),
        cost_estimate=cost,
    )(x3)


def _conv7_sigmoid(feat, w_flat, b_flat, out_dtype, *, Bt, vmem_limit):
    """feat: (N, 2, H, W) f32 -> sigmoid(7x7 conv, 2->1 ch, pad 3): (N,1,H,W)."""
    N, _, H, W = feat.shape
    K = KERNEL_SIZE
    pad = K // 2
    R0 = 8                                         # sublane-tile-aligned interior row
    HP = _round_up(R0 + H + pad, 8)
    WP = max(128, _round_up(W + pad, 128))
    n_blocks = N // Bt

    def kernel(w_ref, b_ref, f_ref, o_ref, pad_ref, shift_ref):
        # Hoisted once per grid step: SMEM taps, bias plane, border zeroing.
        taps = [w_ref[t] for t in range(2 * K * K)]
        bias_plane = jnp.full((H, WP), b_ref[0], jnp.float32)
        # Only the interior is rewritten below, so the borders (and the
        # columns >= W that absorb the jnp.roll wrap-around) stay zero.
        pad_ref[...] = jnp.zeros_like(pad_ref)

        for bt in range(Bt):
            acc = bias_plane
            for src in range(2):                   # 0 = avg map, 1 = max map
                pad_ref[R0:R0 + H, 0:W] = f_ref[bt, src].astype(jnp.float32)
                full = pad_ref[...]                # (HP, WP)
                # K-1 lane shifts per source; the 49 taps below are then plain
                # sublane-offset vreg loads from the shifted copies.
                for kj in range(K):
                    shift_ref[kj] = (full if kj == pad
                                     else jnp.roll(full, pad - kj, axis=1))
                wbase = src * K * K
                for ki in range(K):
                    r0 = R0 + ki - pad
                    for kj in range(K):
                        acc = acc + taps[wbase + ki * K + kj] * \
                            shift_ref[kj, r0:r0 + H, :]
            o_ref[bt, 0] = jax.nn.sigmoid(acc[:, :W]).astype(o_ref.dtype)

    grid_spec = pltpu.PrefetchScalarGridSpec(
        num_scalar_prefetch=2,
        grid=(n_blocks,),
        in_specs=[pl.BlockSpec((Bt, 2, H, W), lambda nb, w, b: (nb, 0, 0, 0))],
        out_specs=pl.BlockSpec((Bt, 1, H, W), lambda nb, w, b: (nb, 0, 0, 0)),
        scratch_shapes=[
            pltpu.VMEM((HP, WP), jnp.float32),      # zero-padded map
            pltpu.VMEM((K, HP, WP), jnp.float32),   # lane-shifted copies
        ],
    )
    cost = pl.CostEstimate(
        flops=int(N * 2 * 2 * K * K * H * W),
        transcendentals=int(N * H * W),
        bytes_accessed=int(N * 2 * H * W * 4
                           + N * H * W * jnp.dtype(out_dtype).itemsize
                           + (2 * K * K + 1) * 4),
    )
    return pl.pallas_call(
        kernel,
        out_shape=jax.ShapeDtypeStruct((N, 1, H, W), out_dtype),
        grid_spec=grid_spec,
        compiler_params=pltpu.CompilerParams(
            dimension_semantics=("parallel",),
            vmem_limit_bytes=vmem_limit,
        ),
        cost_estimate=cost,
    )(w_flat, b_flat, feat)


def spatial_attention(x, conv_weight, conv_bias, *, block_n=8, max_block_c=None):
    """x: (N, C, H, W). conv_weight: (1, 2, 7, 7). conv_bias: (1,)."""
    N, C, H, W = x.shape
    HW = H * W
    vmem_limit = _vmem_limit_bytes()

    # Batch tile: keep >= 2 "parallel" batch blocks whenever N >= 2 so a v7x
    # megacore can shard the grid across both TensorCores.
    bt_cap = block_n if N == 1 else min(block_n, max(1, N // 2))
    Bt = _largest_divisor_leq(N, bt_cap)

    # Size the channel block against the (generation-aware) VMEM budget:
    # double-buffered input blocks + the resident accumulators + output block.
    fixed = (2 * Bt * 8 * HW + 2 * Bt * 2 * HW) * 4
    per_buf_budget = max(Bt * 8 * HW * 4, (int(vmem_limit * 0.7) - fixed) // 2)
    Ct = _choose_block_c(C, Bt, HW, per_buf_budget, max_block_c)

    # Kernel 1: lane-dense channel mean/max reduction (the HBM-bound part).
    feat = _channel_reduce(x.reshape(N, C, HW), Bt=Bt, Ct=Ct,
                           vmem_limit=vmem_limit)
    feat = feat.reshape(N, 2, H, W)                  # free metadata reshape

    # Kernel 2: tiny 7x7 conv + sigmoid on the reduced maps.
    Bt2 = _largest_divisor_leq(N, min(4, bt_cap))
    w_flat = conv_weight.reshape(-1).astype(jnp.float32)     # (2*K*K,)
    b_flat = conv_bias.reshape(-1).astype(jnp.float32)       # (1,)
    return _conv7_sigmoid(feat, w_flat, b_flat, x.dtype, Bt=Bt2,
                          vmem_limit=vmem_limit)


def spatial_attention_ref(x, conv_weight, conv_bias):
    """Pure-JAX reference mirroring the PyTorch forward."""
    avg = jnp.mean(x, axis=1, keepdims=True)
    mx = jnp.max(x, axis=1, keepdims=True)
    feat = jnp.concatenate([avg, mx], axis=1)
    pad = KERNEL_SIZE // 2
    out = lax.conv_general_dilated(
        feat, conv_weight, window_strides=(1, 1),
        padding=((pad, pad), (pad, pad)),
        dimension_numbers=("NCHW", "OIHW", "NCHW"))
    return jax.nn.sigmoid(out + conv_bias.reshape(1, 1, 1, 1))


if __name__ == "__main__":
    key = jax.random.PRNGKey(0)
    kx, kw, kb = jax.random.split(key, 3)

    N, C, H, W = 2, 4, 16, 16
    x = jax.random.normal(kx, (N, C, H, W), dtype=jnp.float32)

    # Deterministic synthetic conv parameters (nn.Conv2d(2, 1, 7, padding=3)).
    conv_weight = jax.random.normal(kw, (1, 2, KERNEL_SIZE, KERNEL_SIZE),
                                    dtype=jnp.float32) * 0.1
    conv_bias = jax.random.normal(kb, (1,), dtype=jnp.float32) * 0.1

    out = jax.block_until_ready(spatial_attention(x, conv_weight, conv_bias))
    ref = spatial_attention_ref(x, conv_weight, conv_bias)
    assert out.shape == (N, 1, H, W)
    assert jnp.allclose(out, ref, atol=1e-5, rtol=1e-5), "mismatch (C=4)"

    # Second config (C=32, capped channel block) exercises the 8-channel
    # chunk fori_loop and the multi-channel-block init/accumulate/finalize.
    C2 = 32
    x2 = jax.random.normal(kx, (N, C2, H, W), dtype=jnp.float32)
    out2 = jax.block_until_ready(
        spatial_attention(x2, conv_weight, conv_bias, max_block_c=16))
    ref2 = spatial_attention_ref(x2, conv_weight, conv_bias)
    assert jnp.allclose(out2, ref2, atol=1e-5, rtol=1e-5), "mismatch (C=32)"

    print("KERNEL_OK")
</pallas_src>

<mosaic_0001>
module attributes {stable_mosaic.version = 11 : i64} {
  func.func @kernel(%arg0: i32, %arg1: i32, %arg2: memref<1x4x256xf32, #tpu.memory_space<vmem>>, %arg3: memref<1x2x256xf32, #tpu.memory_space<vmem>>, %arg4: memref<1x8x256xf32, #tpu.memory_space<vmem>>, %arg5: memref<1x8x256xf32, #tpu.memory_space<vmem>>) attributes {dimension_semantics = [#tpu.dimension_semantics<parallel>, #tpu.dimension_semantics<arbitrary>], iteration_bounds = array<i64: 2, 1>, scalar_prefetch = 0 : i64, scratch_operands = 2 : i64, tpu.core_type = #tpu.core_type<tc>, window_params = [{transform_indices = @transform_0, window_bounds = array<i64: 1, 4, 256>}, {transform_indices = @transform_1, window_bounds = array<i64: 1, 2, 256>}]} {
    %cst = arith.constant 0.000000e+00 : f32
    %0 = vector.broadcast %cst : f32 to vector<1x8x256xf32>
    %cst_0 = arith.constant 0xFF800000 : f32
    %1 = vector.broadcast %cst_0 : f32 to vector<1x8x256xf32>
    %c0_i32 = arith.constant 0 : i32
    %2 = arith.cmpi eq, %arg1, %c0_i32 : i32
    %3 = arith.extui %2 : i1 to i32
    %c0_i32_1 = arith.constant 0 : i32
    %4 = arith.cmpi ne, %3, %c0_i32_1 : i32
    scf.if %4 {
      %c0 = arith.constant 0 : index
      %c0_6 = arith.constant 0 : index
      %c0_7 = arith.constant 0 : index
      %11 = vector.load %arg4[%c0, %c0_6, %c0_7] : memref<1x8x256xf32, #tpu.memory_space<vmem>>, vector<1x8x256xf32>
      tpu.vector_store %arg4[%c0, %c0_6, %c0_7], %0 {strides = array<i32>} : memref<1x8x256xf32, #tpu.memory_space<vmem>>, vector<1x8x256xf32>,
      %c0_8 = arith.constant 0 : index
      %c0_9 = arith.constant 0 : index
      %c0_10 = arith.constant 0 : index
      %12 = vector.load %arg5[%c0_8, %c0_9, %c0_10] : memref<1x8x256xf32, #tpu.memory_space<vmem>>, vector<1x8x256xf32>
      tpu.vector_store %arg5[%c0_8, %c0_9, %c0_10], %1 {strides = array<i32>} : memref<1x8x256xf32, #tpu.memory_space<vmem>>, vector<1x8x256xf32>,
    } else {
    }
    %c0_i32_2 = arith.constant 0 : i32
    %5 = arith.cmpi sgt, %arg1, %c0_i32_2 : i32
    %6 = arith.extui %5 : i1 to i32
    %c0_i32_3 = arith.constant 0 : i32
    %7 = arith.cmpi ne, %6, %c0_i32_3 : i32
    scf.if %7 {
      %c0 = arith.constant 0 : index
      %c0_6 = arith.constant 0 : index
      %c0_7 = arith.constant 0 : index
      %11 = vector.load %arg4[%c0, %c0_6, %c0_7] : memref<1x8x256xf32, #tpu.memory_space<vmem>>, vector<1x8x256xf32>
      %12 = arith.addf %11, %0 : vector<1x8x256xf32>
      %c0_8 = arith.constant 0 : index
      %c0_9 = arith.constant 0 : index
      %c0_10 = arith.constant 0 : index
      %13 = vector.load %arg4[%c0_8, %c0_9, %c0_10] : memref<1x8x256xf32, #tpu.memory_space<vmem>>, vector<1x8x256xf32>
      tpu.vector_store %arg4[%c0_8, %c0_9, %c0_10], %12 {strides = array<i32>} : memref<1x8x256xf32, #tpu.memory_space<vmem>>, vector<1x8x256xf32>,
      %c0_11 = arith.constant 0 : index
      %c0_12 = arith.constant 0 : index
      %c0_13 = arith.constant 0 : index
      %14 = vector.load %arg5[%c0_11, %c0_12, %c0_13] : memref<1x8x256xf32, #tpu.memory_space<vmem>>, vector<1x8x256xf32>
      %15 = arith.maximumf %14, %1 : vector<1x8x256xf32>
      %c0_14 = arith.constant 0 : index
      %c0_15 = arith.constant 0 : index
      %c0_16 = arith.constant 0 : index
      %16 = vector.load %arg5[%c0_14, %c0_15, %c0_16] : memref<1x8x256xf32, #tpu.memory_space<vmem>>, vector<1x8x256xf32>
      tpu.vector_store %arg5[%c0_14, %c0_15, %c0_16], %15 {strides = array<i32>} : memref<1x8x256xf32, #tpu.memory_space<vmem>>, vector<1x8x256xf32>,
    } else {
    }
    %c0_i32_4 = arith.constant 0 : i32
    %8 = arith.cmpi eq, %arg1, %c0_i32_4 : i32
    %9 = arith.extui %8 : i1 to i32
    %c0_i32_5 = arith.constant 0 : i32
    %10 = arith.cmpi ne, %9, %c0_i32_5 : i32
    scf.if %10 {
      %c0 = arith.constant 0 : index
      %c0_6 = arith.constant 0 : index
      %c0_7 = arith.constant 0 : index
      %11 = vector.load %arg4[%c0, %c0_6, %c0_7] : memref<1x8x256xf32, #tpu.memory_space<vmem>>, vector<1x8x256xf32>
      %cst_8 = arith.constant dense<0.000000e+00> : vector<1x256xf32>
      %12 = vector.multi_reduction <add>, %11, %cst_8 [1] : vector<1x8x256xf32> to vector<1x256xf32>
      %c0_9 = arith.constant 0 : index
      %c0_10 = arith.constant 0 : index
      %c0_11 = arith.constant 0 : index
      %13 = vector.load %arg5[%c0_9, %c0_10, %c0_11] : memref<1x8x256xf32, #tpu.memory_space<vmem>>, vector<1x8x256xf32>
      %cst_12 = arith.constant dense<0xFF800000> : vector<1x256xf32>
      %14 = vector.multi_reduction <maximumf>, %13, %cst_12 [1] : vector<1x8x256xf32> to vector<1x256xf32>
      %c0_13 = arith.constant 0 : index
      %c0_14 = arith.constant 0 : index
      %c0_15 = arith.constant 0 : index
      %15 = vector.load %arg2[%c0_13, %c0_14, %c0_15] : memref<1x4x256xf32, #tpu.memory_space<vmem>>, vector<1x4x256xf32>
      %cst_16 = arith.constant dense<0.000000e+00> : vector<1x256xf32>
      %16 = vector.multi_reduction <add>, %15, %cst_16 [1] : vector<1x4x256xf32> to vector<1x256xf32>
      %17 = arith.addf %12, %16 : vector<1x256xf32>
      %cst_17 = arith.constant dense<0xFF800000> : vector<1x256xf32>
      %18 = vector.multi_reduction <maximumf>, %15, %cst_17 [1] : vector<1x4x256xf32> to vector<1x256xf32>
      %19 = arith.maximumf %14, %18 : vector<1x256xf32>
      %cst_18 = arith.constant 2.500000e-01 : f32
      %20 = vector.broadcast %cst_18 : f32 to vector<1x256xf32>
      %21 = arith.mulf %17, %20 : vector<1x256xf32>
      %c0_19 = arith.constant 0 : index
      %c0_20 = arith.constant 0 : index
      %c0_21 = arith.constant 0 : index
      %22 = vector.load %arg3[%c0_19, %c0_20, %c0_21] : memref<1x2x256xf32, #tpu.memory_space<vmem>>, vector<1x1x256xf32>
      %23 = vector.shape_cast %22 : vector<1x1x256xf32> to vector<1x256xf32>
      %24 = vector.shape_cast %21 : vector<1x256xf32> to vector<1x1x256xf32>
      tpu.vector_store %arg3[%c0_19, %c0_20, %c0_21], %24 {strides = array<i32>} : memref<1x2x256xf32, #tpu.memory_space<vmem>>, vector<1x1x256xf32>,
      %c0_22 = arith.constant 0 : index
      %c1 = arith.constant 1 : index
      %c0_23 = arith.constant 0 : index
      %25 = vector.load %arg3[%c0_22, %c1, %c0_23] : memref<1x2x256xf32, #tpu.memory_space<vmem>>, vector<1x1x256xf32>
      %26 = vector.shape_cast %25 : vector<1x1x256xf32> to vector<1x256xf32>
      %27 = vector.shape_cast %19 : vector<1x256xf32> to vector<1x1x256xf32>
      tpu.vector_store %arg3[%c0_22, %c1, %c0_23], %27 {strides = array<i32>} : memref<1x2x256xf32, #tpu.memory_space<vmem>>, vector<1x1x256xf32>,
    } else {
    }
    return
  }
  func.func @transform_0(%arg0: i32, %arg1: i32) -> (i32, i32, i32) {
    %c0_i32 = arith.constant 0 : i32
    %c0_i32_0 = arith.constant 0 : i32
    return %arg0, %arg1, %c0_i32 : i32, i32, i32
  }
  func.func @transform_1(%arg0: i32, %arg1: i32) -> (i32, i32, i32) {
    %c0_i32 = arith.constant 0 : i32
    %c0_i32_0 = arith.constant 0 : i32
    %c0_i32_1 = arith.constant 0 : i32
    return %arg0, %c0_i32, %c0_i32_0 : i32, i32, i32
  }
}

</mosaic_0001>

<bundles_post_ra>
// kernel: tpu_custom_call.1
= control target key start
LH: loop header
LB: loop body
LE: loop exit
PB: predicated region body
PF: predicated region fallthrough
CT: control target
= control target key end

     0   :  { %6 = vsyncpa [#allocation5], 0  ;;  %s766_s0 = inlined_call_operand.hbm [shape: f32[2,4,256], index: 0, kind: input, shape index: {}]   ;;  %s767_s1 = inlined_call_operand.hbm [shape: f32[2,2,256], index: 1, kind: output, shape index: {}]  }
   0x1   :  { %8 = vsyncpa [#allocation5 + $0x1], 0 }
   0x2   :  { %9 = vsyncpa [#allocation6], 0 }
   0x3   :  { %11 = vsyncpa [#allocation6 + $0x1], 0  ;;  %s593_s6 = smov 0   ;;  %s595_s7 = smov 0  }
   0x4   :  { %s597_s8 = smov 0   ;;  %s599_s9 = smov 0  }
   0x5   :  { %s601_s10 = smov 0   ;;  %s603_s11 = smov 0  }
   0x6 LB: > { %s380_s12 = sadd.s32 4294967295, %s576_s11   ;;  %s381_s13 = sadd.s32 4294967294, %s576_s11   ;;  %s576_s11 = sphi %s603_s11, %s17_s11   ;;  %s572_s10 = sphi %s601_s10, %s783_s10   ;;  %s568_s9 = sphi %s599_s9, %s782_s9   ;;  %s564_s8 = sphi %s597_s8, %s781_s8   ;;  %s560_s7 = sphi %s595_s7, %s780_s7   ;;  %s556_s6 = sphi %s593_s6, %s779_s6  }
   0x7   : > { %s29_s14 = sadd.s32 1, %s572_s10  ;;  %s38_s15 = sadd.s32 1, %s564_s8 }
   0x8   : > { %p31_p0 = scmp.ge.s32.totalorder %s29_s14, 2  ;;  %p45_p1 = scmp.ne.s32.totalorder %s564_s8, %s560_s7 }
   0x9   : > { %p46_p2 = scmp.eq.s32.totalorder %s576_s11, 0  ;;  %p51_p3 = scmp.ne.s32.totalorder %s560_s7, %s556_s6 }
   0xa   : > { %s785_s14 = smov (%p31_p0, %s29_s14), 0  ;;  %p52_p5 = scmp.eq.s32.totalorder %s380_s12, 0 }
   0xb   : > { %p634_p4 = por %p46_p2, %p45_p1  ;;  %s33_s17 = ssub.s32 %s572_s10, %s785_s14 }
   0xc   : > { %p75_p6 = scmp.eq.s32.totalorder %s380_s12, 1  ;;  %p36_p7 = scmp.eq.s32.totalorder %s33_s17, 0 }
   0xd   : > { %p640_p8 = por %p52_p5, %p51_p3  ;;  %p81_p10 = scmp.eq.s32.totalorder %s381_s13, 1 }
   0xe   : > { %p644_p9 = por %p75_p6, %p45_p1  ;;  %p410_p13 = scmp.lt.s32.totalorder %s576_s11, 2 }
   0xf   : > { %s649_s20 = scalar_select %p36_p7, %s564_s8, %s38_s15  }
  0x10   : > { %s771_s19 = scalar_select %p644_p9, 1, 0 }
  0x11   : > { %p651_p11 = por %p81_p10, %p51_p3  ;;  %s101_s22 = sand.u32 1, %s564_s8  }
  0x12   : > { %s384_s23 = sshll.u32 %s101_s22, 3  ;;  %s396_s24 = sshll.u32 %s572_s10, 7 }
  0x13   : > { %s772_s21 = scalar_select %p651_p11, 1, 0 }
  0x14   : > { %s662_s27 = scalar_lea.hbm %s766_s0, %s396_s24  ;;  %s105_s28 = scalar_lea.vmem [#allocation4], %s384_s23 }
  0x15   : > { %s115_s29 = sshll.u32 %s105_s28, 4  ;;  %p668_p0 = pnand %p410_p13, %p634_p4  ;;  %s664_s29 = int_to_ptr.vmem [resolvable:$true] %s115_s29 }
  0x16   : > { %s102_s2 = scalar_lea.sflag [#allocation5], %s101_s22  ;;  %s464_s3 = scalar_lea.hbm %s662_s27, 128 }
  0x17   : > { %p465_p3 = scmp.ne.s32.totalorder %s662_s27, %s464_s3  ;;  %p466_p5 = pneg %p668_p0 }
  0x18   : > { %s469_s12 = scalar_lea.hbm %s766_s0, 256  ;;  %p470_p4 = scmp.lt.u32.totalorder %s662_s27, %s766_s0 }
  0x19   : > { %p467_p6 = pnand %p466_p5, %p465_p3  ;;  %p471_p10 = scmp.lt.u32.totalorder %s469_s12, %s464_s3 }
  0x1a   : > { %p473_p12 = scmp.lt.u32.totalorder %s464_s3, %s662_s27 }
  0x1b   : > { %p468_p7 = pneg %p467_p6  ;;  %p472_p13 = por %p471_p10, %p470_p4 }
  0x1d   : > { %p474_p1 = por %p473_p12, %p472_p13 }
  0x1f   : > { %p475_p2 = pnand %p474_p1, %p468_p7 }
  0x21   : > { %478 = shalt.err (!%p475_p2)
}
  0x22   : > { %s479_s16 = scalar_lea.vmem %s664_s29, 128  ;;  %s578_s17 = smov [#allocation4]  }
  0x23   : > { %p480_p3 = scmp.ne.s32.totalorder %s664_s29, %s479_s16  ;;  %s484_s22 = sshll.u32 %s578_s17, 4  ;;  %s485_s22 = int_to_ptr.vmem [resolvable:$false] %s484_s22 }
  0x24   : > { %s486_s23 = scalar_lea.vmem %s485_s22, 256  ;;  %p487_p9 = scmp.lt.s32.totalorder %s664_s29, %s485_s22 }
  0x25   : > { %p482_p6 = pnand %p480_p3, %p466_p5  ;;  %p488_p4 = scmp.lt.s32.totalorder %s486_s23, %s479_s16 }
  0x27   : > { %p483_p11 = pneg %p482_p6  ;;  %p489_p10 = por %p488_p4, %p487_p9 }
  0x29   : > { %p490_p12 = pnand %p489_p10, %p483_p11 }
  0x2b   : > { %493 = shalt.err (!%p490_p12)
}
  0x2c   : > { %405 = dma.hbm_to_vmem [thread:$0]  (!%p668_p0), %s662_s27, 128, %s664_s29, %s102_s2  }
  0x2d   : > { %p774_p1 = scmp.lt.s32.totalorder %s576_s11, 3  ;;  %p775_p2 = scmp.ge.s32.totalorder %s576_s11, 1 }
  0x2f   : > { %p121_p5 = pnand %p775_p2, %p774_p1 }
  0x30   : > { %s704_s24 = sand.u32 (!%p121_p5), 1, %s560_s7  }
  0x31   : > { %124 = sbr.rel (%p121_p5) target bundleno = 97 (0x61), region = 24  ;;  %s388_s25 = sshll.u32 (!%p121_p5), %s704_s24, 3 }
  0x32   : > { %s127_s26 = scalar_lea.sflag (!%p121_p5), [#allocation5], %s704_s24  ;;  %s130_s28 = scalar_lea.vmem (!%p121_p5), [#allocation4], %s388_s25 }
  0x38   : > { %547 = dma.done.wait (%p640_p8), %s127_s26, 128  }
  0x39   : > { %549 = vsyncadd (%p640_p8), %s127_s26, 4294967168  ;;  %v579_v0 = vmov 0.0   ;;  %v580_v2 = vmov -inf   ;;  %vm206_vm0 = vcmask 1043456   ;;  %v202_v7 = vld [vmem:[%s130_s28] sm:$0xff]  ;;  %v247_v28 = vlaneseq  ;;  %s389_s18 = sshll.u32 %s704_s24, 2 }
  0x3a   : > { %v176_v1 = vrot.slane %v579_v0, 4  ;;  %v190_v3 = vrot.slane %v580_v2, 4  ;;  %v204_v8 = vcombine.high %v202_v7, %v202_v7  ;;  %v207_v9 = vsel %vm206_vm0, %v202_v7, 0.0  ;;  %s148_s27 = scalar_lea.vmem [#allocation7], %s389_s18  ;;  %s397_s30 = sshll.u32 %s568_s9, 6 }
  0x3b   : > { %v223_v11 = vsel %vm206_vm0, %v202_v7, -inf  ;;  %v208_v12 = vrot.slane %v207_v9, 4  ;;  %v581_v26 = vmov 1966171168   ;;  %v248_v40 = vshrl.u32 %v247_v28, 7  ;;  %s299_s29 = sshll.u32 %s148_s27, 4  ;;  %s719_s4 = scalar_lea.hbm %s767_s1, %s397_s30  ;;  %s714_s29 = int_to_ptr.vmem [resolvable:$true] %s299_s29 }
  0x3c   : > { %v178_v4 = vrot.slane %v176_v1, 2  ;;  %v192_v5 = vrot.slane %v190_v3, 2  ;;  %v224_v13 = vrot.slane %v223_v11, 4  ;;  %v214_v14 = vsel %vm206_vm0, %v204_v8, 0.0  ;;  %s285_s5 = scalar_lea.sflag [#allocation6], %s704_s24  ;;  %s494_s12 = scalar_lea.vmem %s714_s29, 64 }
  0x3d   : > { %v230_v15 = vsel %vm206_vm0, %v204_v8, -inf  ;;  %v209_v16 = vadd.f32 %v208_v12, %v207_v9  ;;  %v215_v17 = vrot.slane %v214_v14, 4  ;;  %v245_v27 = vunpack.c.l.s4 %v581_v26  ;;  %p495_p8 = scmp.ne.s32.totalorder %s714_s29, %s494_s12  ;;  %p776_p9 = scmp.ne.s32.totalorder %s771_s19, 0 }
  0x3e   : > { %v179_v6 = vadd.f32 %v178_v4, %v176_v1  ;;  %v193_v10 = vmax.f32 %v190_v3, %v192_v5  ;;  %v225_v18 = vmax.f32 %v223_v11, %v224_v13  ;;  %v231_v19 = vrot.slane %v230_v15, 4  ;;  %s582_s9 = smov [#allocation7]  }
  0x3f   : > { %v210_v22 = vrot.slane %v209_v16, 2  ;;  %v216_v23 = vadd.f32 %v215_v17, %v214_v14  ;;  %v246_v39 = vunpack.c.0.s8 %v245_v27  ;;  %vm261_vm1 = vcmp.lt.s32.totalorder %v247_v28, 256  ;;  %p496_p11 = pnand %p495_p8, %p776_p9  ;;  %s498_s13 = sshll.u32 %s582_s9, 4  ;;  %s499_s13 = int_to_ptr.vmem [resolvable:$false] %s498_s13 }
  0x40   : > { %v180_v20 = vrot.slane %v179_v6, 1  ;;  %v194_v21 = vrot.slane %v193_v10, 1  ;;  %v226_v24 = vrot.slane %v225_v18, 2  ;;  %v232_v25 = vmax.f32 %v230_v15, %v231_v19  ;;  %s500_s15 = scalar_lea.vmem %s499_s13, 128  ;;  %p501_p7 = scmp.lt.s32.totalorder %s714_s29, %s499_s13 }
  0x41   : > { %v211_v29 = vadd.f32 %v210_v22, %v209_v16  ;;  %v217_v30 = vrot.slane %v216_v23, 2  ;;  %v249_v51 = vsub.s32 %v246_v39, %v248_v40  ;;  %p497_p0 = pneg %p496_p11  ;;  %p502_p13 = scmp.lt.s32.totalorder %s500_s15, %s494_s12 }
  0x42   : > { %v227_v31 = vmax.f32 %v225_v18, %v226_v24  ;;  %v233_v32 = vrot.slane %v232_v25, 2  ;;  %v181_v33 = vadd.f32 %v180_v20, %v179_v6  ;;  %v195_v34 = vmax.f32 %v193_v10, %v194_v21 }
  0x43   : > { %v212_v35 = vrot.slane %v211_v29, 1  ;;  %v218_v36 = vadd.f32 %v217_v30, %v216_v23  ;;  %p503_p3 = por %p502_p13, %p501_p7 }
  0x44   : > { %v228_v37 = vrot.slane %v227_v31, 1  ;;  %v234_v38 = vmax.f32 %v232_v25, %v233_v32 }
  0x45   : > { %v213_v41 = vadd.f32 %v212_v35, %v211_v29  ;;  %v219_v42 = vrot.slane %v218_v36, 1  ;;  %p504_p6 = pnand %p503_p3, %p497_p0 }
  0x46   : > { %v229_v43 = vmax.f32 %v227_v31, %v228_v37  ;;  %v235_v44 = vrot.slane %v234_v38, 1 }
  0x47   : > { %v220_v45 = vadd.f32 %v219_v42, %v218_v36  ;;  %v221_v46 = vadd.f32 %v213_v41, %v181_v33 }
  0x48   : > { %v236_v47 = vmax.f32 %v234_v38, %v235_v44  ;;  %v237_v48 = vmax.f32 %v195_v34, %v229_v43 }
  0x49   : > { %v222_v49 = vadd.f32 %v220_v45, %v181_v33  ;;  %v239_v50 = vmul.f32 0.25, %v221_v46 }
  0x4a   : > { %v238_v52 = vmax.f32 %v195_v34, %v236_v47 }
  0x4b   : > { %v240_v53 = vmul.f32 0.25, %v222_v49 }
  0x4c   : > { %v266_v54 = vcombine.low %v237_v48, %v238_v52 }
  0x4d   : > { %v243_v55 = vcombine.low %v239_v50, %v240_v53 }
  0x4e   : > { %v273_v56 = vrot.slane %v266_v54, %v249_v51 }
  0x4f   : > { %v250_v57 = vrot.slane %v243_v55, %v249_v51 }
  0x50   : > { %v280_v58 = vrot.slane %v273_v56, %v249_v51 }
  0x51   : > { %v257_v59 = vrot.slane %v250_v57, %v249_v51 }
  0x52   : > { %390 = vst.msk [vmem:[%s148_s27 + $0x1] ss:$2 sm:$0x3] %vm261_vm1, %v280_v58 }
  0x53   : > { %263 = vst.msk [vmem:[%s148_s27] ss:$2 sm:$0x3] %vm261_vm1, %v257_v59 }
  0x54   : > { %507 = shalt.err (!%p504_p6)
}
  0x55   : > { %s508_s16 = scalar_lea.hbm %s719_s4, 64  ;;  %s512_s23 = scalar_lea.hbm %s767_s1, 128 }
  0x56   : > { %p509_p4 = scmp.ne.s32.totalorder %s719_s4, %s508_s16  ;;  %p513_p1 = scmp.lt.u32.totalorder %s719_s4, %s767_s1 }
  0x57   : > { %p514_p2 = scmp.lt.u32.totalorder %s512_s23, %s508_s16  ;;  %p516_p8 = scmp.lt.u32.totalorder %s508_s16, %s719_s4 }
  0x58   : > { %p510_p10 = pnand %p509_p4, %p776_p9 }
  0x59   : > { %p515_p5 = por %p514_p2, %p513_p1 }
  0x5a   : > { %p511_p12 = pneg %p510_p10 }
  0x5b   : > { %p517_p11 = por %p516_p8, %p515_p5 }
  0x5d   : > { %p518_p0 = pnand %p517_p11, %p511_p12 }
  0x5f   : > { %521 = shalt.err (!%p518_p0)
}
  0x60   : > { %400 = dma.vmem_to_hbm [thread:$0]  (%p776_p9), %s714_s29, 64, %s719_s4, %s285_s5  }
  0x61 PF: > { %s311_s26 = sand.u32 1, %s556_s6   ;;  %p777_p7 = scmp.ne.s32.totalorder %s772_s21, 0 }
  0x62   : > { %p778_p13 = scmp.ge.s32.totalorder %s576_s11, 2  ;;  %s312_s28 = scalar_lea.sflag [#allocation6], %s311_s26 }
  0x64   : > { %p407_p3 = pnand %p778_p13, %p777_p7 }
  0x66   : > { %551 = dma.done.wait (!%p407_p3), %s312_s28, 64  }
  0x67   : > { %553 = vsyncadd (!%p407_p3), %s312_s28, 4294967232  ;;  %s17_s11 = sadd.s32 1, %s576_s11   ;;  %s779_s6 = smov %s560_s7 }
  0x68   : > { %p14_p6 = scmp.ge.s32.totalorder %s17_s11, 4   ;;  %s780_s7 = smov %s564_s8 }
  0x69   : > { %s781_s8 = smov %s649_s20  ;;  %s782_s9 = smov %s572_s10 }
  0x6a   : > { %s783_s10 = smov %s785_s14  ;;  %16 = sbr.rel (!%p14_p6) target bundleno = 6 (0x6), region = 82 }
  0x71   :  { %317 = vsyncpa [#allocation5], 1 }
  0x72   :  { %319 = vsyncpa [#allocation5 + $0x1], 1 }
  0x73   :  { %320 = vsyncpa [#allocation6], 1 }
  0x74   :  { %322 = vsyncpa [#allocation6 + $0x1], 1 }

</bundles_post_ra>
